<compile_context>
chip_gen: v7x
topology: tpu7x:2x2x1
jax: 0.10.0
libtpu: 0.0.40
codegen_flags: <defaults>
</compile_context>

<pallas_src>
import jax
import jax.numpy as jnp
import numpy as np
from jax.experimental import pallas as pl
from jax.experimental.pallas import tpu as pltpu


def _round_up(x, m):
    return ((x + m - 1) // m) * m


# ---------------------------------------------------------------------------
# Pallas kernel.
# Grid = (B, HW // TM).  Per step:
#   patches_ref : VMEM (TM, K_pad)      bf16  im2col rows of this batch/tile
#   wconv_ref   : VMEM (K_pad, EC_pad)  bf16  all members' conv weights (+bias row)
#   wfc_ref     : VMEM (EC_pad, NC_pad) bf16  FC weights * ens_w / (H*W)
#   bfc_ref     : VMEM (1, NC_pad)      f32   sum_e ens_w[e]*bfc[e]
#   out_ref     : VMEM (1, NC_pad)      f32   ensemble logits for this batch row
#   acc_ref     : VMEM (1, EC_pad)      f32   pooled-feature accumulator (scratch)
# ---------------------------------------------------------------------------
def ensemble_kernel(patches_ref, wconv_ref, wfc_ref, bfc_ref, out_ref, acc_ref):
    t = pl.program_id(1)

    @pl.when(t == 0)
    def _():
        acc_ref[...] = jnp.zeros_like(acc_ref)

    # Conv2d for all E members at once (bias folded in via the ones column).
    conv = jnp.dot(patches_ref[...], wconv_ref[...],
                   preferred_element_type=jnp.float32)        # (TM, EC_pad) f32
    conv = jnp.maximum(conv, 0.0)                             # ReLU in f32

    # Partial global-average-pool: spatial sum of this tile (1/HW folded into wfc).
    acc_ref[...] += jnp.sum(conv, axis=0, keepdims=True)      # (1, EC_pad)

    @pl.when(t == pl.num_programs(1) - 1)
    def _():
        pooled = acc_ref[...].astype(wfc_ref.dtype)           # bf16 MXU operand
        out_ref[...] = (jnp.dot(pooled, wfc_ref[...],
                                preferred_element_type=jnp.float32)
                        + bfc_ref[...]).astype(out_ref.dtype)


def ensemble_forward(x_nchw, ens_w, wconv_s, bconv_s, wfc_s, bfc_s, *, tile_hw=128):
    """x_nchw: (B, Cin, H, W) f32.  wconv_s: (E, K, Cmid), bconv_s: (E, Cmid),
    wfc_s: (E, Cmid, NC), bfc_s: (E, NC), ens_w: (E,).  Returns (B, NC) f32."""
    B, Cin, H, W = x_nchw.shape
    E, K, Cmid = wconv_s.shape
    NC = wfc_s.shape[-1]
    KH = KW = 3
    pad = 1
    HW = H * W

    EC = E * Cmid
    EC_pad = _round_up(max(EC, 128), 128)      # lane-dense hidden width
    NC_pad = _round_up(max(NC, 128), 128)      # lane-dense output width
    K_bias = K + 1                             # +1 ones column (folded conv bias)
    K_pad = _round_up(K_bias, 8)

    # Spatial tile (rows of the patch matrix per grid step).  Multiple of 8 and
    # a divisor of HW so each tile belongs to exactly one batch element.
    TM = tile_hw if (HW % tile_hw == 0 and tile_hw % 8 == 0) else HW
    n_t = HW // TM

    # ---- glue: im2col (pure JAX reshapes / pads) ----
    xp = jnp.pad(x_nchw, ((0, 0), (0, 0), (pad, pad), (pad, pad)))
    cols = []
    for i in range(KH):
        for j in range(KW):
            cols.append(xp[:, :, i:i + H, j:j + W])            # (B, Cin, H, W)
    patches = jnp.stack(cols, axis=2)                          # (B, Cin, 9, H, W)
    patches = patches.transpose(0, 3, 4, 1, 2).reshape(B, HW, Cin * KH * KW)
    # Append ones column (conv bias fold) and pad K to a multiple of 8.
    patches = jnp.concatenate([patches, jnp.ones((B, HW, 1), jnp.float32)], axis=-1)
    patches = jnp.pad(patches, ((0, 0), (0, 0), (0, K_pad - K_bias)))
    patches = patches.astype(jnp.bfloat16)                     # (B, HW, K_pad)

    # ---- glue: stack member conv weights along N; append bias row; pad ----
    wconv_all = wconv_s.transpose(1, 0, 2).reshape(K, EC)      # (K, E*Cmid)
    wconv_all = jnp.concatenate([wconv_all, bconv_s.reshape(1, EC)], axis=0)
    wconv_all = jnp.pad(wconv_all, ((0, K_pad - K_bias), (0, EC_pad - EC)))
    wconv_all = wconv_all.astype(jnp.bfloat16)                 # (K_pad, EC_pad)

    # Fold the ensemble combine (ens_w) and the 1/(H*W) pooling scale into the
    # FC weights, and the combine into the FC bias.
    scale = (ens_w / float(HW))[:, None, None]                 # (E, 1, 1)
    wfc_all = (wfc_s * scale).reshape(EC, NC)
    wfc_all = jnp.pad(wfc_all, ((0, EC_pad - EC), (0, NC_pad - NC)))
    wfc_all = wfc_all.astype(jnp.bfloat16)                     # (EC_pad, NC_pad)
    bfc_all = jnp.einsum("e,ec->c", ens_w, bfc_s)
    bfc_all = jnp.pad(bfc_all, (0, NC_pad - NC)).reshape(1, NC_pad)  # f32

    out_pad = pl.pallas_call(
        ensemble_kernel,
        out_shape=jax.ShapeDtypeStruct((B, 1, NC_pad), jnp.float32),
        grid_spec=pltpu.PrefetchScalarGridSpec(
            num_scalar_prefetch=0,
            grid=(B, n_t),
            in_specs=[
                # Streamed patch tiles (double-buffered by the pipeline).
                pl.BlockSpec((None, TM, K_pad), lambda b, t: (b, t, 0)),
                # Weights stay resident (constant block index).
                pl.BlockSpec((K_pad, EC_pad), lambda b, t: (0, 0)),
                pl.BlockSpec((EC_pad, NC_pad), lambda b, t: (0, 0)),
                pl.BlockSpec((1, NC_pad), lambda b, t: (0, 0)),
            ],
            out_specs=pl.BlockSpec((None, 1, NC_pad), lambda b, t: (b, 0, 0)),
            scratch_shapes=[pltpu.VMEM((1, EC_pad), jnp.float32)],
        ),
        compiler_params=pltpu.CompilerParams(
            dimension_semantics=("parallel", "arbitrary")),
    )(patches, wconv_all, wfc_all, bfc_all)

    return out_pad[:, 0, :NC]


# ---------------------------------------------------------------------------
# Pure-JAX reference (for correctness check only).
# ---------------------------------------------------------------------------
def _reference(x_nchw, ens_w, wconv_oihw, bconv, wfc_mat, bfc):
    E = ens_w.shape[0]
    logits_all = []
    for e in range(E):
        y = jax.lax.conv_general_dilated(
            x_nchw, wconv_oihw[e], window_strides=(1, 1),
            padding=((1, 1), (1, 1)),
            dimension_numbers=("NCHW", "OIHW", "NCHW"))
        y = jnp.maximum(y + bconv[e][None, :, None, None], 0.0)
        y = y.mean(axis=(2, 3))                                # (B, Cmid)
        logits_all.append(y @ wfc_mat[e] + bfc[e])             # (B, NC)
    stacked = jnp.stack(logits_all)                            # (E, B, NC)
    return jnp.einsum("e,ebc->bc", ens_w, stacked)             # weighted sum over E


if __name__ == "__main__":
    # Small shapes consistent with the module's forward.
    B, Cin, H, W = 2, 4, 16, 16
    Cmid, NC, E = 32, 10, 3
    KH = KW = 3
    K = Cin * KH * KW

    key = jax.random.PRNGKey(0)
    kx, *kws = jax.random.split(key, 1 + 4 * E)

    x = jax.random.normal(kx, (B, Cin, H, W), dtype=jnp.float32)

    wconv_oihw = []   # (E, Cmid, Cin, 3, 3)  -- PyTorch conv weight layout
    bconv_l, wfc_l, bfc_l = [], [], []
    for e in range(E):
        k0, k1, k2, k3 = kws[4 * e: 4 * e + 4]
        wconv_oihw.append(0.1 * jax.random.normal(k0, (Cmid, Cin, KH, KW), jnp.float32))
        bconv_l.append(0.1 * jax.random.normal(k1, (Cmid,), jnp.float32))
        wfc_l.append(0.1 * jax.random.normal(k2, (Cmid, NC), jnp.float32))
        bfc_l.append(0.1 * jax.random.normal(k3, (NC,), jnp.float32))
    wconv_oihw = jnp.stack(wconv_oihw)
    bconv = jnp.stack(bconv_l)
    wfc_mat = jnp.stack(wfc_l)
    bfc = jnp.stack(bfc_l)

    # Logit weights initialised exactly as in Ensemble.__init__: ones / E.
    ens_w = jnp.full((E,), 1.0 / E, dtype=jnp.float32)

    # Repack member conv weights into matmul form:
    #   conv (Cmid, Cin, 3, 3) -> (Cin*9, Cmid).
    wconv_s = wconv_oihw.reshape(E, Cmid, K).transpose(0, 2, 1)   # (E, K, Cmid)

    out = ensemble_forward(x, ens_w, wconv_s, bconv, wfc_mat, bfc)
    out = jax.block_until_ready(out)

    ref = _reference(x, ens_w, wconv_oihw, bconv, wfc_mat, bfc)
    assert out.shape == (B, NC)
    # bf16 MXU operands (f32 accumulation) -> looser tolerance than pure f32.
    np.testing.assert_allclose(np.asarray(out), np.asarray(ref), rtol=2e-2, atol=2e-2)

    print("KERNEL_OK")
</pallas_src>

<mosaic_0001>
module attributes {stable_mosaic.version = 11 : i64} {
  func.func @ensemble_kernel(%arg0: i32, %arg1: i32, %arg2: memref<1x128x40xbf16, #tpu.memory_space<vmem>>, %arg3: memref<40x128xbf16, #tpu.memory_space<vmem>>, %arg4: memref<128x128xbf16, #tpu.memory_space<vmem>>, %arg5: memref<1x128xf32, #tpu.memory_space<vmem>>, %arg6: memref<1x1x128xf32, #tpu.memory_space<vmem>>, %arg7: memref<1x128xf32, #tpu.memory_space<vmem>>) attributes {dimension_semantics = [#tpu.dimension_semantics<parallel>, #tpu.dimension_semantics<arbitrary>], iteration_bounds = array<i64: 2, 2>, scalar_prefetch = 0 : i64, scratch_operands = 1 : i64, tpu.core_type = #tpu.core_type<tc>, window_params = [{transform_indices = @transform_0, window_bounds = array<i64: 1, 128, 40>}, {pipeline_mode = #tpu.pipeline_mode<synchronous>, transform_indices = @transform_1, window_bounds = array<i64: 40, 128>}, {pipeline_mode = #tpu.pipeline_mode<synchronous>, transform_indices = @transform_2, window_bounds = array<i64: 128, 128>}, {pipeline_mode = #tpu.pipeline_mode<synchronous>, transform_indices = @transform_3, window_bounds = array<i64: 1, 128>}, {transform_indices = @transform_4, window_bounds = array<i64: 1, 1, 128>}]} {
    %c0_i32 = arith.constant 0 : i32
    %0 = arith.cmpi eq, %arg1, %c0_i32 : i32
    %1 = arith.extui %0 : i1 to i32
    %c0_i32_0 = arith.constant 0 : i32
    %2 = arith.cmpi ne, %1, %c0_i32_0 : i32
    scf.if %2 {
      %cst_12 = arith.constant 0.000000e+00 : f32
      %17 = vector.broadcast %cst_12 : f32 to vector<1x128xf32>
      %c0_13 = arith.constant 0 : index
      %c0_14 = arith.constant 0 : index
      %18 = vector.load %arg7[%c0_13, %c0_14] : memref<1x128xf32, #tpu.memory_space<vmem>>, vector<1x128xf32>
      tpu.vector_store %arg7[%c0_13, %c0_14], %17 {strides = array<i32>} : memref<1x128xf32, #tpu.memory_space<vmem>>, vector<1x128xf32>,
    } else {
    }
    %c0 = arith.constant 0 : index
    %c0_1 = arith.constant 0 : index
    %c0_2 = arith.constant 0 : index
    %3 = vector.load %arg2[%c0, %c0_1, %c0_2] : memref<1x128x40xbf16, #tpu.memory_space<vmem>>, vector<1x128x40xbf16>
    %4 = vector.shape_cast %3 : vector<1x128x40xbf16> to vector<128x40xbf16>
    %c0_3 = arith.constant 0 : index
    %c0_4 = arith.constant 0 : index
    %5 = vector.load %arg3[%c0_3, %c0_4] : memref<40x128xbf16, #tpu.memory_space<vmem>>, vector<40x128xbf16>
    %cst = arith.constant dense<0.000000e+00> : vector<128x128xf32>
    %6 = tpu.matmul %4, %5, %cst {dimension_numbers = #tpu.dot_dimension_numbers<[1], [0], [0], [1], [0, 0, 1, 1], [], []>} : vector<128x40xbf16>, vector<40x128xbf16>, vector<128x128xf32> -> vector<128x128xf32>
    %cst_5 = arith.constant 0.000000e+00 : f32
    %7 = vector.broadcast %cst_5 : f32 to vector<128x128xf32>
    %8 = arith.maximumf %6, %7 : vector<128x128xf32>
    %c0_6 = arith.constant 0 : index
    %c0_7 = arith.constant 0 : index
    %9 = vector.load %arg7[%c0_6, %c0_7] : memref<1x128xf32, #tpu.memory_space<vmem>>, vector<1x128xf32>
    %cst_8 = arith.constant dense<0.000000e+00> : vector<128xf32>
    %10 = vector.multi_reduction <add>, %8, %cst_8 [0] : vector<128x128xf32> to vector<128xf32>
    %11 = vector.shape_cast %10 : vector<128xf32> to vector<1x128xf32>
    %12 = arith.addf %9, %11 : vector<1x128xf32>
    %c0_9 = arith.constant 0 : index
    %c0_10 = arith.constant 0 : index
    %13 = vector.load %arg7[%c0_9, %c0_10] : memref<1x128xf32, #tpu.memory_space<vmem>>, vector<1x128xf32>
    tpu.vector_store %arg7[%c0_9, %c0_10], %12 {strides = array<i32>} : memref<1x128xf32, #tpu.memory_space<vmem>>, vector<1x128xf32>,
    %c1_i32 = arith.constant 1 : i32
    %14 = arith.cmpi eq, %arg1, %c1_i32 : i32
    %15 = arith.extui %14 : i1 to i32
    %c0_i32_11 = arith.constant 0 : i32
    %16 = arith.cmpi ne, %15, %c0_i32_11 : i32
    scf.if %16 {
      %c0_12 = arith.constant 0 : index
      %c0_13 = arith.constant 0 : index
      %17 = vector.load %arg7[%c0_12, %c0_13] : memref<1x128xf32, #tpu.memory_space<vmem>>, vector<1x128xf32>
      %18 = arith.truncf %17 : vector<1x128xf32> to vector<1x128xbf16>
      %c0_14 = arith.constant 0 : index
      %c0_15 = arith.constant 0 : index
      %19 = vector.load %arg4[%c0_14, %c0_15] : memref<128x128xbf16, #tpu.memory_space<vmem>>, vector<128x128xbf16>
      %cst_16 = arith.constant dense<0.000000e+00> : vector<1x128xf32>
      %20 = tpu.matmul %18, %19, %cst_16 {dimension_numbers = #tpu.dot_dimension_numbers<[1], [0], [0], [1], [0, 0, 1, 1], [], []>} : vector<1x128xbf16>, vector<128x128xbf16>, vector<1x128xf32> -> vector<1x128xf32>
      %c0_17 = arith.constant 0 : index
      %c0_18 = arith.constant 0 : index
      %21 = vector.load %arg5[%c0_17, %c0_18] : memref<1x128xf32, #tpu.memory_space<vmem>>, vector<1x128xf32>
      %22 = arith.addf %20, %21 : vector<1x128xf32>
      %c0_19 = arith.constant 0 : index
      %c0_20 = arith.constant 0 : index
      %c0_21 = arith.constant 0 : index
      %23 = vector.load %arg6[%c0_19, %c0_20, %c0_21] : memref<1x1x128xf32, #tpu.memory_space<vmem>>, vector<1x1x128xf32>
      %24 = vector.shape_cast %23 : vector<1x1x128xf32> to vector<1x128xf32>
      %25 = vector.shape_cast %22 : vector<1x128xf32> to vector<1x1x128xf32>
      tpu.vector_store %arg6[%c0_19, %c0_20, %c0_21], %25 {strides = array<i32>} : memref<1x1x128xf32, #tpu.memory_space<vmem>>, vector<1x1x128xf32>,
    } else {
    }
    return
  }
  func.func @transform_0(%arg0: i32, %arg1: i32) -> (i32, i32, i32) {
    %c0_i32 = arith.constant 0 : i32
    %c0_i32_0 = arith.constant 0 : i32
    return %arg0, %arg1, %c0_i32 : i32, i32, i32
  }
  func.func @transform_1(%arg0: i32, %arg1: i32) -> (i32, i32) {
    %c0_i32 = arith.constant 0 : i32
    %c0_i32_0 = arith.constant 0 : i32
    %c0_i32_1 = arith.constant 0 : i32
    return %c0_i32, %c0_i32_0 : i32, i32
  }
  func.func @transform_2(%arg0: i32, %arg1: i32) -> (i32, i32) {
    %c0_i32 = arith.constant 0 : i32
    %c0_i32_0 = arith.constant 0 : i32
    %c0_i32_1 = arith.constant 0 : i32
    return %c0_i32, %c0_i32_0 : i32, i32
  }
  func.func @transform_3(%arg0: i32, %arg1: i32) -> (i32, i32) {
    %c0_i32 = arith.constant 0 : i32
    %c0_i32_0 = arith.constant 0 : i32
    %c0_i32_1 = arith.constant 0 : i32
    return %c0_i32, %c0_i32_0 : i32, i32
  }
  func.func @transform_4(%arg0: i32, %arg1: i32) -> (i32, i32, i32) {
    %c0_i32 = arith.constant 0 : i32
    %c0_i32_0 = arith.constant 0 : i32
    %c0_i32_1 = arith.constant 0 : i32
    return %arg0, %c0_i32, %c0_i32_0 : i32, i32, i32
  }
}

</mosaic_0001>

<bundles_post_ra>
// kernel: tpu_custom_call.1
= control target key start
LH: loop header
LB: loop body
LE: loop exit
PB: predicated region body
PF: predicated region fallthrough
CT: control target
= control target key end

     0   :  { %9 = vsyncpa [#allocation4], 0  ;;  %s1187_s0 = inlined_call_operand.vmem [shape: bf16[2,256,40], index: 0, kind: input, shape index: {}]   ;;  %s1188_s1 = inlined_call_operand.vmem [shape: bf16[40,128], index: 1, kind: input, shape index: {}]   ;;  %s1189_s2 = inlined_call_operand.vmem [shape: bf16[128,128], index: 2, kind: input, shape index: {}]   ;;  %s1190_s3 = inlined_call_operand.vmem [shape: f32[1,128], index: 3, kind: input, shape index: {}]   ;;  %s1191_s4 = inlined_call_operand.hbm [shape: f32[2,1,128], index: 4, kind: output, shape index: {}]  }
   0x1   :  { %11 = vsyncpa [#allocation4 + $0x1], 0  ;;  %s996_s15 = smov 0   ;;  %s998_s16 = smov 0  }
   0x2   :  { %s1000_s17 = smov 0   ;;  %s1002_s18 = smov 0  }
   0x3   :  { %s1004_s19 = smov 0   ;;  %s1006_s20 = smov 0  }
   0x4   :  { %s1008_s21 = smov 0   ;;  %s1010_s22 = smov 0  }
   0x5 LB: > { %s668_s23 = sadd.s32 4294967295, %s965_s22   ;;  %s669_s24 = sadd.s32 4294967294, %s965_s22   ;;  %s965_s22 = sphi %s1010_s22, %s17_s22   ;;  %s961_s21 = sphi %s1008_s21, %s1200_s21   ;;  %s957_s20 = sphi %s1006_s20, %s1199_s20   ;;  %s953_s19 = sphi %s1004_s19, %s1198_s19   ;;  %s949_s18 = sphi %s1002_s18, %s1197_s18   ;;  %s945_s17 = sphi %s1000_s17, %s1196_s17   ;;  %s941_s16 = sphi %s998_s16, %s1195_s16   ;;  %s937_s15 = sphi %s996_s15, %s1194_s15  }
   0x6   : > { %s26_s25 = sadd.s32 1, %s957_s20  ;;  %s29_s26 = sadd.s32 1, %s961_s21 }
   0x7   : > { %p27_p0 = scmp.ge.s32.totalorder %s26_s25, 2  ;;  %p137_p1 = scmp.ne.s32.totalorder %s945_s17, %s941_s16 }
   0x8   : > { %p138_p2 = scmp.eq.s32.totalorder %s668_s23, 3  ;;  %p143_p4 = scmp.ne.s32.totalorder %s941_s16, %s937_s15 }
   0x9   : > { %s1202_s25 = smov (%p27_p0, %s26_s25), 0  ;;  %s1204_s26 = smov (!%p27_p0, %s29_s26), %s961_s21 }
   0xa   : > { %p1045_p3 = por %p138_p2, %p137_p1  ;;  %p31_p5 = scmp.ge.s32.totalorder %s1204_s26, 2 }
   0xb   : > { %p144_p6 = scmp.eq.s32.totalorder %s669_s24, 3  ;;  %p672_p7 = scmp.ge.s32.totalorder %s965_s22, 1 }
   0xc   : > { %p184_p8 = scmp.lt.s32.totalorder %s965_s22, 5  ;;  %s1206_s26 = smov (%p31_p5, %s1204_s26), 0 }
   0xd   : > { %p1055_p9 = por %p144_p6, %p143_p4  ;;  %s124_s29 = ssub.s32 %s961_s21, %s1206_s26 }
   0xe   : > { %p185_p10 = pnand %p672_p7, %p184_p8  ;;  %s127_s30 = sadd.s32 1, %s945_s17 }
   0xf   : > { %p125_p11 = scmp.eq.s32.totalorder %s124_s29, 0  ;;  %s211_s6 = sand.u32 (!%p185_p10), 1, %s941_s16  }
  0x10   : > { %188 = sbr.rel (%p185_p10) target bundleno = 554 (0x22a), region = 36  ;;  %s673_s7 = sshll.u32 (!%p185_p10), %s949_s18, 4 }
  0x11   : > { %s1063_s5 = scalar_select %p125_p11, %s945_s17, %s127_s30  }
  0x12   : > { %p214_p12 = scmp.lt.s32.totalorder (!%p185_p10), %s953_s19, 1  ;;  %p216_p13 = scmp.lt.s32.totalorder (!%p185_p10), %s673_s7, 31 }
  0x13   : > { %s1076_s23 = scalar_lea.vmem (!%p185_p10), [#allocation3], %s211_s6  ;;  %p676_p0 = scmp.ne.s32.totalorder (!%p185_p10), %s949_s18, 0 }
  0x17   : > { %s215_s8 = scalar_select %p214_p12, %s953_s19, 1 }
  0x18   : > { %s1208_s7 = smov (!%p216_p13, %s673_s7), 31  ;;  %227 = sbr.rel (%p676_p0) target bundleno = 31 (0x1f), region = 40 }
  0x19   : > { %s674_s9 = sshll.u32 %s215_s8, 5  ;;  %v967_v0 = vmov (!%p676_p0), 0.0  }
  0x1a   : > { %s219_s10 = sadd.s32 %s674_s9, %s1208_s7  ;;  %228 = vst [vmem:[#allocation2] sm:$0x1] (!%p676_p0), %v967_v0 }
  0x1b   : > { %s675_s11 = sshll.u32 %s219_s10, 2 }
  0x1c   : > { %s1072_s14 = scalar_lea.vmem %s1187_s0, %s675_s11 }
  0x1f PF: > { %v852_v1 = vld [vmem:[%s1188_s1] sm:$0xff]   ;;  %v853_v2 = vld [vmem:[%s1188_s1 + $0x8] sm:$0xff]   ;;  %vm305_vm0 = vcmask 326656   ;;  %v854_v4 = vld [vmem:[%s1188_s1 + $0x10] ss:$0 sps:$4 sm:$0xff]   ;;  %vm330_vm1 = vcmask 1043456  }
  0x20   : > { %728 = vmatprep.subr.bf16.mxu0 %v852_v1  ;;  %770 = vmatprep.subr.bf16.mxu1 %v852_v1  ;;  %v855_v3 = vld [vmem:[%s1072_s14] sm:$0xff]   ;;  %v332_v6 = vsel %vm330_vm1, %v854_v4, 0  ;;  %v856_v7 = vld [vmem:[%s1072_s14 + $0x8] sm:$0xff]   ;;  %v857_v9 = vld [vmem:[%s1072_s14 + $0x10] sm:$0xff]   ;;  %p696_p1 = scmp.ne.s32.totalorder %s949_s18, 1 }
  0x21   : > { %729 = vmatpush3.bf16.msra.mxu0 %v852_v1  ;;  %773 = vmatpush3.bf16.msra.mxu1 %v852_v1  ;;  %v859_v5 = vld [vmem:[%s1072_s14 + $0x20] sm:$0xff]   ;;  %v860_v8 = vld [vmem:[%s1072_s14 + $0x28] sm:$0xff]   ;;  %v861_v10 = vld [vmem:[%s1072_s14 + $0x30] sm:$0xff]   ;;  %vm969_vm2 = vmmov (!%p696_p1), 0  }
  0x22   : > { %730 = vmatprep.subr.bf16.mxu0 %v853_v2  ;;  %771 = vmatprep.subr.bf16.mxu1 %v853_v2  ;;  %v858_v11 = vld [vmem:[%s1072_s14 + $0x18] sm:$0xff]   ;;  %v447_v1 = vld [vmem:[#allocation2] sm:$0x1] }
  0x23   : > { %734 = vmatprep.mubr.msk.bf16.mxu0 %vm305_vm0, %v855_v3  ;;  %742 = vmatprep.mubr.msk.bf16.mxu1 %vm305_vm0, %v859_v5  ;;  %v862_v12 = vld [vmem:[%s1072_s14 + $0x38] sm:$0xff]   ;;  %v968_v5 = vmov (!%p696_p1), 0.0  }
  0x25   : > { %731 = vmatpush3.bf16.msra.mxu0 %v853_v2  ;;  %774 = vmatpush3.bf16.msra.mxu1 %v853_v2 }
  0x26   : > { %776 = vmatprep.subr.msk.bf16.mxu0 %vm330_vm1, %v854_v4  ;;  %777 = vmatprep.subr.msk.bf16.mxu1 %vm330_vm1, %v854_v4  ;;  %v863_v4 = vld [vmem:[%s1189_s2] sm:$0xff] (!%p696_p1)  }
  0x29   : > { %733 = vmatpush3.bf16.msra.mxu0 %v332_v6  ;;  %775 = vmatpush3.bf16.msra.mxu1 %v332_v6  ;;  %v864_v6 = vld [vmem:[%s1189_s2 + $0x8] sm:$0xff] (!%p696_p1)  }
  0x2a   : > { %750 = vmatprep.subr.bf16.mxu0 (!%p696_p1), %v968_v5 }
  0x2c   : > { %735 = vmatmul.mubr.msk.bf16.vlgmr.msra.gmra.mrb[0].mxu0 %vm305_vm0, %v856_v7  ;;  %743 = vmatmul.mubr.msk.bf16.vlgmr.msra.gmra.mrb[0].mxu1 %vm305_vm0, %v860_v8  ;;  %v865_v7 = vld [vmem:[%s1189_s2 + $0x10] sm:$0xff] (!%p696_p1)   ;;  %v866_v8 = vld [vmem:[%s1189_s2 + $0x18] sm:$0xff] (!%p696_p1)  }
  0x2d   : > { %738 = vmatprep.mubr.msk.bf16.mxu0 %vm305_vm0, %v857_v9  ;;  %746 = vmatprep.mubr.msk.bf16.mxu1 %vm305_vm0, %v861_v10  ;;  %v867_v9 = vld [vmem:[%s1189_s2 + $0x20] sm:$0xff] (!%p696_p1)   ;;  %v868_v10 = vld [vmem:[%s1189_s2 + $0x28] sm:$0xff] (!%p696_p1)  }
  0x2e   : > { %751 = vmatpush3.bf16.msra.mxu0 (!%p696_p1), %v863_v4 }
  0x2f   : > { %752 = vmatprep.subr.bf16.mxu0 (!%p696_p1), %v968_v5 }
  0x32   : > { %753 = vmatpush3.bf16.msra.mxu0 (!%p696_p1), %v864_v6 }
  0x33   : > { %754 = vmatprep.subr.bf16.mxu0 (!%p696_p1), %v968_v5 }
  0x34   : > { %739 = vmatmul.mubr.msk.bf16.gmra.mrb[4].mxu0 %vm305_vm0, %v858_v11  ;;  %747 = vmatmul.mubr.msk.bf16.gmra.mrb[4].mxu1 %vm305_vm0, %v862_v12  ;;  %v869_v11 = vld [vmem:[%s1189_s2 + $0x30] sm:$0xff] (!%p696_p1)   ;;  %v870_v12 = vld [vmem:[%s1189_s2 + $0x38] sm:$0xff] (!%p696_p1)  }
  0x35   : > { %766 = vmatprep.mubr.msk.bf16.mxu0 (!%p696_p1), %vm969_vm2, %v968_v5 }
  0x36   : > { %755 = vmatpush3.bf16.msra.mxu0 (!%p696_p1), %v865_v7 }
  0x37   : > { %756 = vmatprep.subr.bf16.mxu0 (!%p696_p1), %v968_v5 }
  0x3a   : > { %757 = vmatpush3.bf16.msra.mxu0 (!%p696_p1), %v866_v8 }
  0x3b   : > { %758 = vmatprep.subr.bf16.mxu0 (!%p696_p1), %v968_v5 }
  0x3e   : > { %759 = vmatpush3.bf16.msra.mxu0 (!%p696_p1), %v867_v9 }
  0x3f   : > { %760 = vmatprep.subr.bf16.mxu0 (!%p696_p1), %v968_v5 }
  0x42   : > { %761 = vmatpush3.bf16.msra.mxu0 (!%p696_p1), %v868_v10 }
  0x43   : > { %762 = vmatprep.subr.bf16.mxu0 (!%p696_p1), %v968_v5 }
  0x46   : > { %763 = vmatpush3.bf16.msra.mxu0 (!%p696_p1), %v869_v11 }
  0x47   : > { %764 = vmatprep.subr.bf16.mxu0 (!%p696_p1), %v968_v5 }
  0x4a   : > { %765 = vmatpush3.bf16.msra.mxu0 (!%p696_p1), %v870_v12 }
  0xff   : > { %v736_v13 = vpop.f32.mrb[0].mxu0  ;;  %v744_v14 = vpop.f32.mrb[0].mxu1 }
 0x100   : > { %v368_v15 = vpop.f32.mrb[1].mxu0  ;;  %v400_v16 = vpop.f32.mrb[1].mxu1  ;;  %v433_v23 = vmax.f32 %v736_v13, 0.0  ;;  %v441_v47 = vmax.f32 %v744_v14, 0.0 }
 0x101   : > { %v737_v17 = vpop.f32.mrb[2].mxu0  ;;  %v745_v18 = vpop.f32.mrb[2].mxu1  ;;  %v431_v21 = vmax.f32 %v368_v15, 0.0  ;;  %v439_v43 = vmax.f32 %v400_v16, 0.0  ;;  %v493_v15 = vld [vmem:[%s1190_s3] sm:$0x1] (!%p696_p1) }
 0x102   : > { %v371_v19 = vpop.f32.mrb[3].mxu0  ;;  %v403_v20 = vpop.f32.mrb[3].mxu1  ;;  %v434_v25 = vmax.f32 %v737_v17, 0.0  ;;  %v442_v49 = vmax.f32 %v745_v18, 0.0 }
 0x103   : > { %v432_v22 = vmax.f32 %v371_v19, 0.0  ;;  %v440_v46 = vmax.f32 %v403_v20, 0.0 }
 0x105   : > { %v448_v24 = vadd.f32 %v432_v22, %v431_v21 }
 0x107   : > { %v449_v26 = vadd.f32 %v448_v24, %v433_v23  ;;  %v740_v27 = vpop.f32.mrb[4].mxu0  ;;  %v748_v28 = vpop.f32.mrb[4].mxu1 }
 0x108   : > { %v384_v29 = vpop.f32.mrb[5].mxu0  ;;  %v416_v30 = vpop.f32.mrb[5].mxu1  ;;  %v437_v39 = vmax.f32 %v740_v27, 0.0  ;;  %v445_v55 = vmax.f32 %v748_v28, 0.0 }
 0x109   : > { %v435_v31 = vmax.f32 %v384_v29, 0.0  ;;  %v450_v32 = vadd.f32 %v449_v26, %v434_v25  ;;  %v741_v33 = vpop.f32.mrb[6].mxu0  ;;  %v749_v34 = vpop.f32.mrb[6].mxu1  ;;  %v443_v51 = vmax.f32 %v416_v30, 0.0 }
 0x10a   : > { %v387_v35 = vpop.f32.mrb[7].mxu0  ;;  %v419_v36 = vpop.f32.mrb[7].mxu1  ;;  %v438_v41 = vmax.f32 %v741_v33, 0.0  ;;  %v446_v57 = vmax.f32 %v749_v34, 0.0 }
 0x10b   : > { %v451_v37 = vadd.f32 %v450_v32, %v435_v31  ;;  %v436_v38 = vmax.f32 %v387_v35, 0.0  ;;  %v444_v54 = vmax.f32 %v419_v36, 0.0 }
 0x10d   : > { %v452_v40 = vadd.f32 %v451_v37, %v436_v38 }
 0x10f   : > { %v453_v42 = vadd.f32 %v452_v40, %v437_v39 }
 0x111   : > { %v454_v44 = vadd.f32 %v453_v42, %v438_v41 }
 0x113   : > { %v455_v45 = vadd.f32 %v454_v44, %v439_v43 }
 0x115   : > { %v456_v48 = vadd.f32 %v455_v45, %v440_v46 }
 0x117   : > { %v457_v50 = vadd.f32 %v456_v48, %v441_v47 }
 0x119   : > { %v458_v52 = vadd.f32 %v457_v50, %v442_v49 }
 0x11b   : > { %v459_v53 = vadd.f32 %v458_v52, %v443_v51 }
 0x11d   : > { %v460_v56 = vadd.f32 %v459_v53, %v444_v54 }
 0x11f   : > { %v461_v58 = vadd.f32 %v460_v56, %v445_v55 }
 0x121   : > { %v462_v59 = vadd.f32 %v461_v58, %v446_v57 }
 0x123   : > { %v463_v60 = vrot.slane %v462_v59, 4 }
 0x125   : > { %v464_v61 = vadd.f32 %v463_v60, %v462_v59 }
 0x127   : > { %v465_v62 = vrot.slane %v464_v61, 2 }
 0x129   : > { %v466_v63 = vadd.f32 %v465_v62, %v464_v61 }
 0x12b   : > { %v467_v0 = vrot.slane %v466_v63, 1  ;;  %474 = sbr.rel (%p696_p1) target bundleno = 530 (0x212), region = 44 }
 0x12d   : > { %v468_v2 = vadd.f32 %v467_v0, %v466_v63 }
 0x12f   : > { %v469_v3 = vadd.f32 %v468_v2, %v447_v1 }
 0x131   : > { %470 = vst [vmem:[#allocation2] sm:$0x1] %v469_v3 }
 0x138   : > { %v475_v13 = vld [vmem:[#allocation2] sm:$0x1] }
 0x139   : > { %v476_v14 = vpack.c.bf16 %v475_v13, %v475_v13 }
 0x13b   : > { %767 = vmatmul.mubr.bf16.vlgmr.msra.gmra.mrb[0].mxu0 %v476_v14 }
 0x20e   : > { %v576_v16 = vpop.f32.mrb[0].mxu0 }
 0x20f   : > { %v577_v17 = vadd.f32 %v576_v16, %v493_v15  ;;  %v768_v18 = vpop.f32.mrb[1].mxu0 }
 0x210   : > { %v579_v19 = vpop.f32.mrb[2].mxu0 }
 0x211   : > { %582 = vst [vmem:[%s1076_s23] sm:$0x1] %v577_v17  ;;  %v769_v20 = vpop.f32.mrb[3].mxu0 }
 0x212 PF: > { %s705_s18 = sshll.u32 %s953_s19, 4  ;;  %s596_s8 = sshll.u32 %s1076_s23, 4  ;;  %s597_s8 = int_to_ptr.vmem [resolvable:$true] %s596_s8 }
 0x213   : > { %s1137_s7 = scalar_lea.hbm %s1191_s4, %s705_s18  ;;  %s584_s9 = scalar_lea.sflag [#allocation4], %s211_s6 }
 0x214   : > { %s871_s10 = scalar_lea.vmem %s597_s8, 16  ;;  %s970_s11 = smov [#allocation3]  }
 0x215   : > { %p872_p2 = scmp.ne.s32.totalorder %s597_s8, %s871_s10  ;;  %s875_s12 = sshll.u32 %s970_s11, 4  ;;  %s876_s12 = int_to_ptr.vmem [resolvable:$false] %s875_s12 }
 0x216   : > { %s877_s13 = scalar_lea.vmem %s876_s12, 32  ;;  %p878_p6 = scmp.lt.s32.totalorder %s597_s8, %s876_s12 }
 0x217   : > { %p873_p4 = pnand %p872_p2, %p1045_p3  ;;  %p879_p7 = scmp.lt.s32.totalorder %s877_s13, %s871_s10 }
 0x219   : > { %p874_p5 = pneg %p873_p4  ;;  %p880_p8 = por %p879_p7, %p878_p6 }
 0x21b   : > { %p881_p10 = pnand %p880_p8, %p874_p5 }
 0x21d   : > { %884 = shalt.err (!%p881_p10)
}
 0x21e   : > { %s885_s19 = scalar_lea.hbm %s1137_s7, 16  ;;  %s889_s14 = scalar_lea.hbm %s1191_s4, 32 }
 0x21f   : > { %p886_p11 = scmp.ne.s32.totalorder %s1137_s7, %s885_s19  ;;  %p890_p0 = scmp.lt.u32.totalorder %s1137_s7, %s1191_s4 }
 0x220   : > { %p891_p1 = scmp.lt.u32.totalorder %s889_s14, %s885_s19  ;;  %p893_p4 = scmp.lt.u32.totalorder %s885_s19, %s1137_s7 }
 0x221   : > { %p887_p12 = pnand %p886_p11, %p1045_p3 }
 0x222   : > { %p892_p2 = por %p891_p1, %p890_p0 }
 0x223   : > { %p888_p13 = pneg %p887_p12 }
 0x224   : > { %p894_p5 = por %p893_p4, %p892_p2 }
 0x226   : > { %p895_p6 = pnand %p894_p5, %p888_p13 }
 0x228   : > { %898 = shalt.err (!%p895_p6)
}
 0x229   : > { %778 = dma.vmem_to_hbm [thread:$0]  (%p1045_p3), %s597_s8, 16, %s1137_s7, %s584_s9  }
 0x22a PF: > { %p784_p7 = scmp.ge.s32.totalorder %s965_s22, 2  ;;  %s608_s29 = sand.u32 1, %s937_s15  }
 0x22b   : > { %s609_s30 = scalar_lea.sflag [#allocation4], %s608_s29 }
 0x22c   : > { %p781_p8 = pnand %p784_p7, %p1055_p9 }
 0x22e   : > { %932 = dma.done.wait (!%p781_p8), %s609_s30, 16  }
 0x22f   : > { %934 = vsyncadd (!%p781_p8), %s609_s30, 4294967280  ;;  %s17_s22 = sadd.s32 1, %s965_s22   ;;  %s1194_s15 = smov %s941_s16 }
 0x230   : > { %p14_p10 = scmp.ge.s32.totalorder %s17_s22, 6   ;;  %s1195_s16 = smov %s945_s17 }
 0x231   : > { %s1196_s17 = smov %s1063_s5  ;;  %s1197_s18 = smov %s957_s20 }
 0x232   : > { %s1198_s19 = smov %s961_s21  ;;  %s1199_s20 = smov %s1202_s25 }
 0x233   : > { %s1200_s21 = smov %s1206_s26  ;;  %16 = sbr.rel (!%p14_p10) target bundleno = 5 (0x5), region = 79 }
 0x23a   :  { %613 = vsyncpa [#allocation4], 1 }
 0x23b   :  { %615 = vsyncpa [#allocation4 + $0x1], 1 }

</bundles_post_ra>
